<compile_context>
chip_gen: v7x
topology: tpu7x:2x2x1
jax: 0.10.0
libtpu: 0.0.40
codegen_flags: <defaults>
</compile_context>

<pallas_src>
import jax
import jax.numpy as jnp
from jax.experimental import pallas as pl
from jax.experimental.pallas import tpu as pltpu


def _round_up(x, m):
    return (x + m - 1) // m * m


def _mxu_pad(d):
    # Lane dims feeding the MXU: at least 128; once the real dim exceeds 128,
    # pad to a 256-multiple (v6e/v7x MXUs are 256x256; harmless on v5e).
    return 128 if d <= 128 else _round_up(d, 256)


def actor_kernel(x_ref, w1_ref, b1_ref, w2_ref, b2_ref, wmu_ref, bmu_ref,
                 mu_ref):
    # Weights arrive pre-cast to bf16 (prepared once outside the hot path);
    # biases stay f32 so adds/relu happen on the f32 accumulator.
    x = x_ref[...].astype(jnp.bfloat16)                       # (tb, in_dim)
    h1 = jnp.dot(x, w1_ref[...],
                 preferred_element_type=jnp.float32) + b1_ref[...]
    h1 = jnp.maximum(h1, 0.0)
    h2 = jnp.dot(h1.astype(jnp.bfloat16), w2_ref[...],
                 preferred_element_type=jnp.float32) + b2_ref[...]
    h2 = jnp.maximum(h2, 0.0)
    mu = jnp.dot(h2.astype(jnp.bfloat16), wmu_ref[...],
                 preferred_element_type=jnp.float32) + bmu_ref[...]
    mu_ref[...] = mu          # lane-dense (out_p multiple of 128) unmasked vst
    # TODO(synk): torch.distributions.Normal object construction has no Pallas
    # equivalent; the wrapper returns (mu, std), i.e. the Normal's parameters.


def prepare_actor_params(params):
    """One-time prep (call once, outside the per-step hot path):
    pad weights to MXU-friendly lane widths, cast them to bf16, keep biases
    f32, and precompute the clamped std row."""
    w1, b1, w2, b2, wmu, bmu, log_std = params
    in_dim, hid = w1.shape
    out_dim = wmu.shape[1]
    hid_p = _mxu_pad(hid)
    out_p = _mxu_pad(out_dim)

    def pad2(a, rows, cols, dtype):
        a = a.reshape((-1, a.shape[-1]))
        return jnp.pad(a, ((0, rows - a.shape[0]),
                           (0, cols - a.shape[1]))).astype(dtype)

    return dict(
        in_dim=in_dim, hid=hid, out_dim=out_dim, hid_p=hid_p, out_p=out_p,
        # K of the first matmul stays the real in_dim (no state lane padding).
        w1=pad2(w1, in_dim, hid_p, jnp.bfloat16),
        b1=pad2(b1, 1, hid_p, jnp.float32),
        w2=pad2(w2, hid_p, hid_p, jnp.bfloat16),
        b2=pad2(b2, 1, hid_p, jnp.float32),
        wmu=pad2(wmu, hid_p, out_p, jnp.bfloat16),
        bmu=pad2(bmu, 1, out_p, jnp.float32),
        std_row=jnp.clip(jnp.exp(log_std.reshape(1, -1)), 1e-6, 1.0),
    )


def actor_forward(state, prepared, *, block_b=512):
    """state: [B, input_dim] f32. Returns (mu, std) -- the Normal's params."""
    in_dim = prepared["in_dim"]
    hid_p, out_p, out_dim = prepared["hid_p"], prepared["out_p"], prepared["out_dim"]
    B = state.shape[0]
    assert state.shape[1] == in_dim

    # Batch: sublane-align only (multiple of 8); no lane padding of the state,
    # no padding up to the tile size (partial final blocks are handled by
    # Pallas and the wrapper slices the result to [:B]).
    b8 = _round_up(B, 8)
    x = state if b8 == B else jnp.pad(state, ((0, b8 - B), (0, 0)))

    tb = min(block_b, b8)
    if b8 > 8 and pl.cdiv(b8, tb) < 2:
        # Guarantee >=2 grid steps so the "parallel" batch axis can be
        # sharded across both v7x TensorCores (no-op on v5e/v6e).
        tb = _round_up(pl.cdiv(b8, 2), 8)
    grid = (pl.cdiv(b8, tb),)

    # Weights/biases: full-extent blocks pinned to block (0, 0) -> DMA'd once,
    # VMEM-resident across the whole batch grid.
    pinned = lambda shape: pl.BlockSpec(shape, lambda i: (0, 0))

    mu_p = pl.pallas_call(
        actor_kernel,
        out_shape=jax.ShapeDtypeStruct((b8, out_p), jnp.float32),
        grid=grid,
        in_specs=[
            # state tile, streamed; last dim equals the full array dim so no
            # lane padding / extra HBM copy is needed.
            pl.BlockSpec((tb, in_dim), lambda i: (i, 0)),
            pinned((in_dim, hid_p)),
            pinned((1, hid_p)),
            pinned((hid_p, hid_p)),
            pinned((1, hid_p)),
            pinned((hid_p, out_p)),
            pinned((1, out_p)),
        ],
        out_specs=pl.BlockSpec((tb, out_p), lambda i: (i, 0)),
        compiler_params=pltpu.CompilerParams(
            dimension_semantics=("parallel",)),
    )(x, prepared["w1"], prepared["b1"], prepared["w2"], prepared["b2"],
      prepared["wmu"], prepared["bmu"])

    mu = mu_p[:B, :out_dim]
    # std is batch-independent: precomputed at prep, broadcast lazily here.
    std = jnp.broadcast_to(prepared["std_row"], mu.shape)
    return mu, std


def xavier_uniform(key, fan_in, fan_out):
    bound = jnp.sqrt(6.0 / (fan_in + fan_out))
    return jax.random.uniform(key, (fan_in, fan_out), jnp.float32, -bound, bound)


def init_actor_params(key, input_dim, hidden_dim, output_dim):
    k1, k2, k3 = jax.random.split(key, 3)
    w1 = xavier_uniform(k1, input_dim, hidden_dim)
    b1 = jnp.zeros((1, hidden_dim), jnp.float32)
    w2 = xavier_uniform(k2, hidden_dim, hidden_dim)
    b2 = jnp.zeros((1, hidden_dim), jnp.float32)
    wmu = xavier_uniform(k3, hidden_dim, output_dim)
    bmu = jnp.zeros((1, output_dim), jnp.float32)
    log_std = jnp.zeros((1, output_dim), jnp.float32)
    return (w1, b1, w2, b2, wmu, bmu, log_std)


if __name__ == "__main__":
    input_dim, hidden_dim, output_dim = 8, 32, 4
    batch = 2

    key = jax.random.PRNGKey(0)
    pkey, skey, bkey = jax.random.split(key, 3)
    w1, b1, w2, b2, wmu, bmu, log_std = init_actor_params(
        pkey, input_dim, hidden_dim, output_dim)
    # Perturb biases / log_std so the bias-add and clamp(exp(.)) paths are
    # actually exercised (zero-init would mask bugs there).
    kb1, kb2, kbm, kls = jax.random.split(bkey, 4)
    b1 = 0.1 * jax.random.normal(kb1, b1.shape, jnp.float32)
    b2 = 0.1 * jax.random.normal(kb2, b2.shape, jnp.float32)
    bmu = 0.1 * jax.random.normal(kbm, bmu.shape, jnp.float32)
    log_std = 0.5 * jax.random.normal(kls, log_std.shape, jnp.float32)
    params = (w1, b1, w2, b2, wmu, bmu, log_std)

    prepared = prepare_actor_params(params)    # one-time prep, off hot path
    state = jax.random.normal(skey, (batch, input_dim), jnp.float32)

    mu, std = actor_forward(state, prepared)
    jax.block_until_ready((mu, std))

    # Reference check in plain JAX (f32). Kernel uses bf16 MXU operands with
    # f32 accumulation -> loosened tolerance on mu.
    h1 = jnp.maximum(state @ w1 + b1, 0.0)
    h2 = jnp.maximum(h1 @ w2 + b2, 0.0)
    mu_ref = h2 @ wmu + bmu
    std_ref = jnp.broadcast_to(jnp.clip(jnp.exp(log_std), 1e-6, 1.0), mu_ref.shape)
    assert mu.shape == mu_ref.shape and std.shape == std_ref.shape
    assert jnp.allclose(mu, mu_ref, atol=3e-2, rtol=3e-2), "mu mismatch"
    assert jnp.allclose(std, std_ref, atol=1e-6), "std mismatch"

    print("KERNEL_OK")
</pallas_src>

<mosaic_0001>
module attributes {stable_mosaic.version = 11 : i64} {
  func.func @actor_kernel(%arg0: i32, %arg1: memref<8x8xf32, #tpu.memory_space<vmem>>, %arg2: memref<8x128xbf16, #tpu.memory_space<vmem>>, %arg3: memref<1x128xf32, #tpu.memory_space<vmem>>, %arg4: memref<128x128xbf16, #tpu.memory_space<vmem>>, %arg5: memref<1x128xf32, #tpu.memory_space<vmem>>, %arg6: memref<128x128xbf16, #tpu.memory_space<vmem>>, %arg7: memref<1x128xf32, #tpu.memory_space<vmem>>, %arg8: memref<8x128xf32, #tpu.memory_space<vmem>>) attributes {dimension_semantics = [#tpu.dimension_semantics<parallel>], iteration_bounds = array<i64: 1>, scalar_prefetch = 0 : i64, scratch_operands = 0 : i64, tpu.core_type = #tpu.core_type<tc>, window_params = [{transform_indices = @transform_0, window_bounds = array<i64: 8, 8>}, {pipeline_mode = #tpu.pipeline_mode<synchronous>, transform_indices = @transform_1, window_bounds = array<i64: 8, 128>}, {pipeline_mode = #tpu.pipeline_mode<synchronous>, transform_indices = @transform_2, window_bounds = array<i64: 1, 128>}, {pipeline_mode = #tpu.pipeline_mode<synchronous>, transform_indices = @transform_3, window_bounds = array<i64: 128, 128>}, {pipeline_mode = #tpu.pipeline_mode<synchronous>, transform_indices = @transform_4, window_bounds = array<i64: 1, 128>}, {pipeline_mode = #tpu.pipeline_mode<synchronous>, transform_indices = @transform_5, window_bounds = array<i64: 128, 128>}, {pipeline_mode = #tpu.pipeline_mode<synchronous>, transform_indices = @transform_6, window_bounds = array<i64: 1, 128>}, {transform_indices = @transform_7, window_bounds = array<i64: 8, 128>}]} {
    %c0 = arith.constant 0 : index
    %c0_0 = arith.constant 0 : index
    %0 = vector.load %arg1[%c0, %c0_0] : memref<8x8xf32, #tpu.memory_space<vmem>>, vector<8x8xf32>
    %1 = arith.truncf %0 : vector<8x8xf32> to vector<8x8xbf16>
    %c0_1 = arith.constant 0 : index
    %c0_2 = arith.constant 0 : index
    %2 = vector.load %arg2[%c0_1, %c0_2] : memref<8x128xbf16, #tpu.memory_space<vmem>>, vector<8x128xbf16>
    %cst = arith.constant dense<0.000000e+00> : vector<8x128xf32>
    %3 = tpu.matmul %1, %2, %cst {dimension_numbers = #tpu.dot_dimension_numbers<[1], [0], [0], [1], [0, 0, 1, 1], [], []>} : vector<8x8xbf16>, vector<8x128xbf16>, vector<8x128xf32> -> vector<8x128xf32>
    %c0_3 = arith.constant 0 : index
    %c0_4 = arith.constant 0 : index
    %4 = vector.load %arg3[%c0_3, %c0_4] : memref<1x128xf32, #tpu.memory_space<vmem>>, vector<1x128xf32>
    %5 = vector.broadcast %4 : vector<1x128xf32> to vector<8x128xf32>
    %6 = arith.addf %3, %5 : vector<8x128xf32>
    %cst_5 = arith.constant 0.000000e+00 : f32
    %7 = vector.broadcast %cst_5 : f32 to vector<8x128xf32>
    %8 = arith.maximumf %6, %7 : vector<8x128xf32>
    %9 = arith.truncf %8 : vector<8x128xf32> to vector<8x128xbf16>
    %c0_6 = arith.constant 0 : index
    %c0_7 = arith.constant 0 : index
    %10 = vector.load %arg4[%c0_6, %c0_7] : memref<128x128xbf16, #tpu.memory_space<vmem>>, vector<128x128xbf16>
    %cst_8 = arith.constant dense<0.000000e+00> : vector<8x128xf32>
    %11 = tpu.matmul %9, %10, %cst_8 {dimension_numbers = #tpu.dot_dimension_numbers<[1], [0], [0], [1], [0, 0, 1, 1], [], []>} : vector<8x128xbf16>, vector<128x128xbf16>, vector<8x128xf32> -> vector<8x128xf32>
    %c0_9 = arith.constant 0 : index
    %c0_10 = arith.constant 0 : index
    %12 = vector.load %arg5[%c0_9, %c0_10] : memref<1x128xf32, #tpu.memory_space<vmem>>, vector<1x128xf32>
    %13 = vector.broadcast %12 : vector<1x128xf32> to vector<8x128xf32>
    %14 = arith.addf %11, %13 : vector<8x128xf32>
    %cst_11 = arith.constant 0.000000e+00 : f32
    %15 = vector.broadcast %cst_11 : f32 to vector<8x128xf32>
    %16 = arith.maximumf %14, %15 : vector<8x128xf32>
    %17 = arith.truncf %16 : vector<8x128xf32> to vector<8x128xbf16>
    %c0_12 = arith.constant 0 : index
    %c0_13 = arith.constant 0 : index
    %18 = vector.load %arg6[%c0_12, %c0_13] : memref<128x128xbf16, #tpu.memory_space<vmem>>, vector<128x128xbf16>
    %cst_14 = arith.constant dense<0.000000e+00> : vector<8x128xf32>
    %19 = tpu.matmul %17, %18, %cst_14 {dimension_numbers = #tpu.dot_dimension_numbers<[1], [0], [0], [1], [0, 0, 1, 1], [], []>} : vector<8x128xbf16>, vector<128x128xbf16>, vector<8x128xf32> -> vector<8x128xf32>
    %c0_15 = arith.constant 0 : index
    %c0_16 = arith.constant 0 : index
    %20 = vector.load %arg7[%c0_15, %c0_16] : memref<1x128xf32, #tpu.memory_space<vmem>>, vector<1x128xf32>
    %21 = vector.broadcast %20 : vector<1x128xf32> to vector<8x128xf32>
    %22 = arith.addf %19, %21 : vector<8x128xf32>
    %c0_17 = arith.constant 0 : index
    %c0_18 = arith.constant 0 : index
    %23 = vector.load %arg8[%c0_17, %c0_18] : memref<8x128xf32, #tpu.memory_space<vmem>>, vector<8x128xf32>
    tpu.vector_store %arg8[%c0_17, %c0_18], %22 {strides = array<i32>} : memref<8x128xf32, #tpu.memory_space<vmem>>, vector<8x128xf32>,
    return
  }
  func.func @transform_0(%arg0: i32) -> (i32, i32) {
    %c0_i32 = arith.constant 0 : i32
    %c0_i32_0 = arith.constant 0 : i32
    return %arg0, %c0_i32 : i32, i32
  }
  func.func @transform_1(%arg0: i32) -> (i32, i32) {
    %c0_i32 = arith.constant 0 : i32
    %c0_i32_0 = arith.constant 0 : i32
    %c0_i32_1 = arith.constant 0 : i32
    return %c0_i32, %c0_i32_0 : i32, i32
  }
  func.func @transform_2(%arg0: i32) -> (i32, i32) {
    %c0_i32 = arith.constant 0 : i32
    %c0_i32_0 = arith.constant 0 : i32
    %c0_i32_1 = arith.constant 0 : i32
    return %c0_i32, %c0_i32_0 : i32, i32
  }
  func.func @transform_3(%arg0: i32) -> (i32, i32) {
    %c0_i32 = arith.constant 0 : i32
    %c0_i32_0 = arith.constant 0 : i32
    %c0_i32_1 = arith.constant 0 : i32
    return %c0_i32, %c0_i32_0 : i32, i32
  }
  func.func @transform_4(%arg0: i32) -> (i32, i32) {
    %c0_i32 = arith.constant 0 : i32
    %c0_i32_0 = arith.constant 0 : i32
    %c0_i32_1 = arith.constant 0 : i32
    return %c0_i32, %c0_i32_0 : i32, i32
  }
  func.func @transform_5(%arg0: i32) -> (i32, i32) {
    %c0_i32 = arith.constant 0 : i32
    %c0_i32_0 = arith.constant 0 : i32
    %c0_i32_1 = arith.constant 0 : i32
    return %c0_i32, %c0_i32_0 : i32, i32
  }
  func.func @transform_6(%arg0: i32) -> (i32, i32) {
    %c0_i32 = arith.constant 0 : i32
    %c0_i32_0 = arith.constant 0 : i32
    %c0_i32_1 = arith.constant 0 : i32
    return %c0_i32, %c0_i32_0 : i32, i32
  }
  func.func @transform_7(%arg0: i32) -> (i32, i32) {
    %c0_i32 = arith.constant 0 : i32
    %c0_i32_0 = arith.constant 0 : i32
    return %arg0, %c0_i32 : i32, i32
  }
}

</mosaic_0001>

<bundles_post_ra>
// kernel: tpu_custom_call.1
= control target key start
LH: loop header
LB: loop body
LE: loop exit
PB: predicated region body
PF: predicated region fallthrough
CT: control target
= control target key end

     0   :  { %12 = vsyncpa [#allocation3], 0  ;;  %s751_s0 = inlined_call_operand.hbm [shape: f32[8,8], index: 0, kind: input, shape index: {}]   ;;  %s752_s1 = inlined_call_operand.hbm [shape: bf16[8,128], index: 1, kind: input, shape index: {}]   ;;  %s753_s2 = inlined_call_operand.vmem [shape: f32[1,128], index: 2, kind: input, shape index: {}]   ;;  %s754_s3 = inlined_call_operand.hbm [shape: bf16[128,128], index: 3, kind: input, shape index: {}]   ;;  %s755_s4 = inlined_call_operand.vmem [shape: f32[1,128], index: 4, kind: input, shape index: {}]   ;;  %s756_s5 = inlined_call_operand.hbm [shape: bf16[128,128], index: 5, kind: input, shape index: {}]   ;;  %s757_s6 = inlined_call_operand.vmem [shape: f32[1,128], index: 6, kind: input, shape index: {}]   ;;  %s758_s7 = inlined_call_operand.hbm [shape: f32[8,128], index: 7, kind: output, shape index: {}]  }
   0x1   :  { %13 = vsyncpa [#allocation6], 0 }
   0x2   :  { %14 = vsyncpa [#allocation9], 0 }
   0x3   :  { %15 = vsyncpa [#allocation4], 0  ;;  %s610_s24 = smov [#allocation5]   ;;  %s611_s26 = smov [#allocation2]  }
   0x4   :  { %s32_s25 = sshll.u32 %s610_s24, 4  ;;  %s22_s27 = sshll.u32 %s611_s26, 4  ;;  %s33_s25 = int_to_ptr.vmem [resolvable:$true] %s32_s25  ;;  %s23_s27 = int_to_ptr.vmem [resolvable:$true] %s22_s27 }
   0x5   :  { %s492_s30 = scalar_lea.hbm %s752_s1, 64 }
   0x6   :  { %p493_p0 = scmp.ne.s32.totalorder %s752_s1, %s492_s30  ;;  %p496_p1 = scmp.lt.u32.totalorder %s492_s30, %s752_s1 }
   0x8   :  { %p498_p2 = pnand %p496_p1, %p493_p0 }
   0xa   :  { %501 = shalt.err (!%p498_p2)
}
   0xb   :  { %s502_s12 = scalar_lea.vmem %s33_s25, 64  ;;  %p507_p4 = scmp.lt.s32.totalorder %s33_s25, %s33_s25 }
   0xc   :  { %p503_p3 = scmp.ne.s32.totalorder %s33_s25, %s502_s12  ;;  %p508_p5 = scmp.lt.s32.totalorder %s502_s12, %s502_s12 }
   0xe   :  { %p509_p6 = por %p508_p5, %p507_p4 }
  0x10   :  { %p510_p7 = pnand %p509_p6, %p503_p3 }
  0x12   :  { %513 = shalt.err (!%p510_p7)
}
  0x13   :  { %35 = dma.hbm_to_vmem [thread:$0]  %s752_s1, 64, %s33_s25, [#allocation6]  }
  0x14   :  { %s514_s17 = scalar_lea.hbm %s751_s0, 128 }
  0x15   :  { %p515_p8 = scmp.ne.s32.totalorder %s751_s0, %s514_s17  ;;  %p518_p9 = scmp.lt.u32.totalorder %s514_s17, %s751_s0 }
  0x17   :  { %p520_p10 = pnand %p518_p9, %p515_p8 }
  0x19   :  { %523 = shalt.err (!%p520_p10)
}
  0x1a   :  { %s524_s22 = scalar_lea.vmem %s23_s27, 128  ;;  %p529_p12 = scmp.lt.s32.totalorder %s23_s27, %s23_s27 }
  0x1b   :  { %p525_p11 = scmp.ne.s32.totalorder %s23_s27, %s524_s22  ;;  %p530_p13 = scmp.lt.s32.totalorder %s524_s22, %s524_s22 }
  0x1d   :  { %p531_p0 = por %p530_p13, %p529_p12 }
  0x1f   :  { %p532_p1 = pnand %p531_p0, %p525_p11 }
  0x21   :  { %535 = shalt.err (!%p532_p1)
}
  0x22   :  { %25 = dma.hbm_to_vmem [thread:$0]  %s751_s0, 128, %s23_s27, [#allocation3]  }
  0x23   :  { %s612_s24 = smov [#allocation7]   ;;  %s536_s29 = scalar_lea.hbm %s754_s3, 1024 }
  0x24   :  { %s43_s25 = sshll.u32 %s612_s24, 4  ;;  %p537_p2 = scmp.ne.s32.totalorder %s754_s3, %s536_s29  ;;  %s44_s25 = int_to_ptr.vmem [resolvable:$true] %s43_s25 }
  0x25   :  { %p540_p3 = scmp.lt.u32.totalorder %s536_s29, %s754_s3 }
  0x27   :  { %p542_p4 = pnand %p540_p3, %p537_p2 }
  0x29   :  { %545 = shalt.err (!%p542_p4)
}
  0x2a   :  { %s546_s11 = scalar_lea.vmem %s44_s25, 1024  ;;  %p551_p6 = scmp.lt.s32.totalorder %s44_s25, %s44_s25 }
  0x2b   :  { %p547_p5 = scmp.ne.s32.totalorder %s44_s25, %s546_s11  ;;  %p552_p7 = scmp.lt.s32.totalorder %s546_s11, %s546_s11 }
  0x2d   :  { %p553_p8 = por %p552_p7, %p551_p6 }
  0x2f   :  { %p554_p9 = pnand %p553_p8, %p547_p5 }
  0x31   :  { %557 = shalt.err (!%p554_p9)
}
  0x32   :  { %s613_s0 = smov 64   ;;  %s614_s27 = smov 4  }
  0x33   :  { %49 = dma.hbm_to_vmem [thread:$0]  %s754_s3, 1024, %s44_s25, [#allocation6], %s613_s0, %s613_s0, %s614_s27  }
  0x34   :  { %s615_s14 = smov [#allocation8]   ;;  %s558_s18 = scalar_lea.hbm %s756_s5, 1024 }
  0x35   :  { %s57_s15 = sshll.u32 %s615_s14, 4  ;;  %p559_p10 = scmp.ne.s32.totalorder %s756_s5, %s558_s18  ;;  %s58_s15 = int_to_ptr.vmem [resolvable:$true] %s57_s15 }
  0x36   :  { %p562_p11 = scmp.lt.u32.totalorder %s558_s18, %s756_s5 }
  0x38   :  { %p564_p12 = pnand %p562_p11, %p559_p10 }
  0x3a   :  { %567 = shalt.err (!%p564_p12)
}
  0x3b   :  { %s568_s1 = scalar_lea.vmem %s58_s15, 1024  ;;  %p573_p0 = scmp.lt.s32.totalorder %s58_s15, %s58_s15 }
  0x3c   :  { %p569_p13 = scmp.ne.s32.totalorder %s58_s15, %s568_s1  ;;  %p574_p1 = scmp.lt.s32.totalorder %s568_s1, %s568_s1 }
  0x3e   :  { %p575_p2 = por %p574_p1, %p573_p0 }
  0x40   :  { %p576_p3 = pnand %p575_p2, %p569_p13 }
  0x42   :  { %579 = shalt.err (!%p576_p3)
}
  0x43   :  { %63 = dma.hbm_to_vmem [thread:$0]  %s756_s5, 1024, %s58_s15, [#allocation9], %s613_s0, %s613_s0, %s614_s27  }
  0x44   :  { %602 = dma.done.wait [#allocation3], 128  }
  0x45   :  { %603 = vsyncadd [#allocation3], 4294967168 }
  0x46   :  { %604 = dma.done.wait [#allocation6], 1088  }
  0x47   :  { %605 = vsyncadd [#allocation6], 4294966208 }
  0x48   :  { %606 = dma.done.wait [#allocation9], 1024  }
  0x49   :  { %607 = vsyncadd [#allocation9], 4294966272  ;;  %v616_v0 = vmov 0.0   ;;  %vm617_vm0 = vmmov 0   ;;  %vm93_vm1 = vcmask 1043456   ;;  %v79_v2 = vld [vmem:[#allocation2] sm:$0xff] }
  0x4a   :  { %421 = vmatprep.subr.bf16.mxu0 %v616_v0  ;;  %423 = vmatprep.mubr.msk.bf16.mxu0 %vm617_vm0, %v616_v0  ;;  %v81_v1 = vld [vmem:[#allocation5] sm:$0xf]  ;;  %v80_v4 = vpack.c.bf16 %v79_v2, %v79_v2  ;;  %v476_v5 = vld [vmem:[#allocation7] sm:$0xff]   ;;  %vm89_vm2 = vcmask 64512   ;;  %v477_v6 = vld [vmem:[#allocation7 + $0x8] sm:$0xff]   ;;  %s618_s29 = smov [#allocation10]  }
  0x4b   :  { %427 = vmatprep.subr.bf16.mxu1 %v616_v0  ;;  %443 = vmatprep.mubr.msk.bf16.mxu1 %vm617_vm0, %v616_v0  ;;  %v95_v3 = vsel %vm93_vm1, %v81_v1, 0  ;;  %v478_v7 = vld [vmem:[#allocation7 + $0x10] sm:$0xff]   ;;  %v479_v8 = vld [vmem:[#allocation7 + $0x18] sm:$0xff]   ;;  %v480_v9 = vld [vmem:[#allocation7 + $0x20] sm:$0xff]   ;;  %s370_s30 = sshll.u32 %s618_s29, 4  ;;  %s371_s30 = int_to_ptr.vmem [resolvable:$true] %s370_s30 }
  0x4c   :  { %422 = vmatpush3.bf16.msra.mxu0 %v95_v3  ;;  %428 = vmatpush3.bf16.msra.mxu1 %v476_v5  ;;  %v481_v10 = vld [vmem:[#allocation7 + $0x28] sm:$0xff]   ;;  %v482_v11 = vld [vmem:[#allocation7 + $0x30] sm:$0xff]   ;;  %v483_v12 = vld [vmem:[#allocation7 + $0x38] sm:$0xff]   ;;  %p585_p5 = scmp.lt.s32.totalorder %s371_s30, %s371_s30 }
  0x4d   :  { %447 = vmatprep.subr.bf16.mxu0 %v616_v0  ;;  %429 = vmatprep.subr.bf16.mxu1 %v616_v0  ;;  %v484_v13 = vld [vmem:[#allocation8] sm:$0xff]   ;;  %v485_v14 = vld [vmem:[#allocation8 + $0x8] sm:$0xff]   ;;  %v486_v15 = vld [vmem:[#allocation8 + $0x10] sm:$0xff]  }
  0x4e   :  { %v487_v16 = vld [vmem:[#allocation8 + $0x18] sm:$0xff]   ;;  %v488_v17 = vld [vmem:[#allocation8 + $0x20] sm:$0xff]   ;;  %v489_v18 = vld [vmem:[#allocation8 + $0x28] sm:$0xff]  }
  0x4f   :  { %424 = vmatmul.mubr.msk.bf16.vlgmr.msra.gmra.mrb[0].mxu0 %vm89_vm2, %v80_v4  ;;  %v381_v19 = vld [vmem:[%s753_s2] ss:$0 sm:$0xff]  ;;  %v491_v28 = vld [vmem:[#allocation8 + $0x38] sm:$0xff]  }
  0x50   :  { %463 = vmatprep.mubr.msk.bf16.mxu0 %vm617_vm0, %v616_v0  ;;  %430 = vmatpush3.bf16.msra.mxu1 %v477_v6  ;;  %v490_v27 = vld [vmem:[#allocation8 + $0x30] sm:$0xff]  }
  0x51   :  { %431 = vmatprep.subr.bf16.mxu1 %v616_v0  ;;  %448 = vmatpush3.bf16.msra.mxu0 %v484_v13  ;;  %v383_v29 = vld [vmem:[%s755_s4] ss:$0 sm:$0xff]  ;;  %s580_s4 = scalar_lea.vmem %s371_s30, 128 }
  0x52   :  { %449 = vmatprep.subr.bf16.mxu0 %v616_v0  ;;  %v392_v37 = vld [vmem:[%s757_s6] ss:$0 sm:$0xff]  ;;  %p581_p4 = scmp.ne.s32.totalorder %s371_s30, %s580_s4  ;;  %p586_p6 = scmp.lt.s32.totalorder %s580_s4, %s580_s4 }
  0x54   :  { %432 = vmatpush3.bf16.msra.mxu1 %v478_v7  ;;  %p587_p7 = por %p586_p6, %p585_p5 }
  0x55   :  { %433 = vmatprep.subr.bf16.mxu1 %v616_v0  ;;  %450 = vmatpush3.bf16.msra.mxu0 %v485_v14 }
  0x56   :  { %451 = vmatprep.subr.bf16.mxu0 %v616_v0  ;;  %p588_p8 = pnand %p587_p7, %p581_p4 }
  0x58   :  { %434 = vmatpush3.bf16.msra.mxu1 %v479_v8 }
  0x59   :  { %435 = vmatprep.subr.bf16.mxu1 %v616_v0  ;;  %452 = vmatpush3.bf16.msra.mxu0 %v486_v15 }
  0x5a   :  { %453 = vmatprep.subr.bf16.mxu0 %v616_v0 }
  0x5c   :  { %436 = vmatpush3.bf16.msra.mxu1 %v480_v9 }
  0x5d   :  { %437 = vmatprep.subr.bf16.mxu1 %v616_v0  ;;  %454 = vmatpush3.bf16.msra.mxu0 %v487_v16 }
  0x5e   :  { %455 = vmatprep.subr.bf16.mxu0 %v616_v0 }
  0x60   :  { %438 = vmatpush3.bf16.msra.mxu1 %v481_v10 }
  0x61   :  { %439 = vmatprep.subr.bf16.mxu1 %v616_v0  ;;  %456 = vmatpush3.bf16.msra.mxu0 %v488_v17 }
  0x62   :  { %457 = vmatprep.subr.bf16.mxu0 %v616_v0 }
  0x64   :  { %440 = vmatpush3.bf16.msra.mxu1 %v482_v11 }
  0x65   :  { %441 = vmatprep.subr.bf16.mxu1 %v616_v0  ;;  %458 = vmatpush3.bf16.msra.mxu0 %v489_v18 }
  0x66   :  { %459 = vmatprep.subr.bf16.mxu0 %v616_v0 }
  0x68   :  { %442 = vmatpush3.bf16.msra.mxu1 %v483_v12 }
  0x69   :  { %460 = vmatpush3.bf16.msra.mxu0 %v490_v27 }
  0x6a   :  { %461 = vmatprep.subr.bf16.mxu0 %v616_v0 }
  0x6d   :  { %462 = vmatpush3.bf16.msra.mxu0 %v491_v28 }
 0x122   :  { %v131_v20 = vpop.f32.mrb[0].mxu0 }
 0x123   :  { %v132_v21 = vadd.f32 %v381_v19, %v131_v20  ;;  %v425_v22 = vpop.f32.mrb[1].mxu0 }
 0x124   :  { %v134_v23 = vpop.f32.mrb[2].mxu0 }
 0x125   :  { %v137_v24 = vmax.f32 %v132_v21, 0.0  ;;  %v426_v25 = vpop.f32.mrb[3].mxu0 }
 0x127   :  { %v138_v26 = vpack.c.bf16 %v137_v24, %v137_v24 }
 0x129   :  { %444 = vmatmul.mubr.bf16.vlgmr.msra.gmra.mrb[0].mxu1 %v138_v26 }
 0x1fc   :  { %v244_v30 = vpop.f32.mrb[0].mxu1 }
 0x1fd   :  { %v245_v31 = vadd.f32 %v383_v29, %v244_v30  ;;  %v445_v32 = vpop.f32.mrb[1].mxu1 }
 0x1fe   :  { %v247_v33 = vpop.f32.mrb[2].mxu1 }
 0x1ff   :  { %v250_v34 = vmax.f32 %v245_v31, 0.0  ;;  %v446_v35 = vpop.f32.mrb[3].mxu1 }
 0x201   :  { %v251_v36 = vpack.c.bf16 %v250_v34, %v250_v34 }
 0x203   :  { %464 = vmatmul.mubr.bf16.vlgmr.msra.gmra.mrb[4].mxu0 %v251_v36 }
 0x2d6   :  { %v357_v38 = vpop.f32.mrb[4].mxu0 }
 0x2d7   :  { %v358_v39 = vadd.f32 %v392_v37, %v357_v38  ;;  %v465_v40 = vpop.f32.mrb[5].mxu0 }
 0x2d8   :  { %v360_v41 = vpop.f32.mrb[6].mxu0 }
 0x2d9   :  { %363 = vst [vmem:[#allocation10] sm:$0xff] %v358_v39  ;;  %v466_v42 = vpop.f32.mrb[7].mxu0 }
 0x2da   :  { %591 = shalt.err (!%p588_p8)
}
 0x2db   :  { %s592_s6 = scalar_lea.hbm %s758_s7, 128 }
 0x2dc   :  { %p593_p9 = scmp.ne.s32.totalorder %s758_s7, %s592_s6  ;;  %p596_p10 = scmp.lt.u32.totalorder %s592_s6, %s758_s7 }
 0x2de   :  { %p598_p11 = pnand %p596_p10, %p593_p9 }
 0x2e0   :  { %601 = shalt.err (!%p598_p11)
}
 0x2e1   :  { %373 = dma.vmem_to_hbm [thread:$0]  %s371_s30, 128, %s758_s7, [#allocation4]  }
 0x2e2   :  { %608 = dma.done.wait [#allocation4], 128  }
 0x2e3   :  { %609 = vsyncadd [#allocation4], 4294967168 }
 0x2e4   :  { %377 = vsyncpa [#allocation3], 1 }
 0x2e5   :  { %378 = vsyncpa [#allocation6], 1 }
 0x2e6   :  { %379 = vsyncpa [#allocation9], 1 }
 0x2e7   :  { %380 = vsyncpa [#allocation4], 1 }

</bundles_post_ra>
